<compile_context>
chip_gen: v5e
topology: v5e:2x2
jax: 0.10.0
libtpu: 0.0.40
codegen_flags: <defaults>
</compile_context>

<pallas_src>
import functools

import jax
import jax.numpy as jnp
from jax.experimental import pallas as pl
from jax.experimental.pallas import tpu as pltpu


def _triplet_kernel(a_ref, p_ref, n_ref, o_ref, *, margin, seg_size, n_seg, batch):
    """One (TB, n_seg*seg_size) tile of (possibly lane-packed) rows.

    Each packed row holds `n_seg` original rows of `seg_size` features.
    Writes the per-original-row hinge value to o_ref (shape (TB, n_seg)).
    """
    a = a_ref[...].astype(jnp.float32)
    p = p_ref[...].astype(jnp.float32)
    n = n_ref[...].astype(jnp.float32)

    dp = a - p
    dn = a - n
    sq = dp * dp - dn * dn                       # (TB, n_seg*seg_size), lane-dense

    tb = a.shape[0]
    local = jax.lax.broadcasted_iota(jnp.int32, (tb, 1), 0)   # row within block
    packed_row = pl.program_id(0) * tb + local                # (TB, 1)

    # n_seg is small and static (<= 128/seg_size); unrolled Python loop.
    for j in range(n_seg):
        seg = sq[:, j * seg_size:(j + 1) * seg_size]          # (TB, seg_size)
        dist = jnp.sum(seg, axis=1, keepdims=True) + margin   # (TB, 1)
        hinge = jnp.maximum(dist, 0.0)
        # Mask rows past the true batch (partial last grid block / padding) so
        # they contribute exactly 0 to the final sum.
        orig_row = packed_row * n_seg + j
        hinge = jnp.where(orig_row < batch, hinge, 0.0)
        o_ref[:, j:j + 1] = hinge


def triplet_margin_loss(anchor, positive, negative, margin, *, block_rows=None):
    """Pallas TPU implementation of TripletMarginLoss.forward (squared distances)."""
    assert anchor.shape == positive.shape == negative.shape
    assert anchor.ndim == 2
    B, D = anchor.shape
    itemsize = jnp.dtype(anchor.dtype).itemsize

    # --- Lane packing: make the feature axis 128-lane dense when D < 128. ---
    k = 1
    if D < 128 and 128 % D == 0 and B % (128 // D) == 0:
        k = 128 // D
    Gp, Dp = B // k, k * D
    if k > 1:
        anchor = anchor.reshape(Gp, Dp)
        positive = positive.reshape(Gp, Dp)
        negative = negative.reshape(Gp, Dp)

    # --- Batch tile size: ~2 MiB / input / pipeline buffer, multiple of 16 ---
    # (16-row granularity is safe for both f32 and bf16 sublane tiling).
    if block_rows is not None:
        TB = min(block_rows, Gp)
    else:
        bytes_per_row = Dp * itemsize
        TB = max(16, ((2 * 1024 * 1024) // max(bytes_per_row, 1)) // 16 * 16)
        TB = min(TB, 4096)
    if Gp <= TB:
        TB = Gp            # single full block; block dim == full dim is allowed
    grid = (pl.cdiv(Gp, TB),)

    kernel = functools.partial(
        _triplet_kernel,
        margin=float(margin),
        seg_size=D,
        n_seg=k,
        batch=B,
    )

    in_spec = pl.BlockSpec((TB, Dp), lambda i: (i, 0))

    hinge = pl.pallas_call(
        kernel,
        out_shape=jax.ShapeDtypeStruct((Gp, k), jnp.float32),
        grid_spec=pltpu.PrefetchScalarGridSpec(
            num_scalar_prefetch=0,
            grid=grid,
            in_specs=[in_spec, in_spec, in_spec],
            out_specs=pl.BlockSpec((TB, k), lambda i: (i, 0)),
        ),
        compiler_params=pltpu.CompilerParams(
            dimension_semantics=("parallel",),
        ),
        cost_estimate=pl.CostEstimate(
            flops=5 * B * D,
            transcendentals=0,
            bytes_accessed=3 * B * D * itemsize + B * 4,
        ),
    )(anchor, positive, negative)

    # Final mean: tiny (B,)-sized reduction outside the kernel. Invalid rows
    # were masked to 0 in-kernel, so sum * (1/B) is exact.
    return jnp.sum(hinge) * (1.0 / B)


def triplet_margin_loss_ref(anchor, positive, negative, margin):
    dist = jnp.sum((anchor - positive) ** 2 - (anchor - negative) ** 2, axis=1) + margin
    return jnp.mean(jnp.maximum(dist, 0.0))


if __name__ == "__main__":
    key = jax.random.PRNGKey(0)
    k_a, k_p, k_n = jax.random.split(key, 3)
    margin = 1.0

    # Case 1: small feature dim — exercises the lane-packing path (D=32 -> k=4).
    B, D = 8, 32
    a = jax.random.normal(k_a, (B, D), dtype=jnp.float32)
    p = jax.random.normal(k_p, (B, D), dtype=jnp.float32)
    n = jax.random.normal(k_n, (B, D), dtype=jnp.float32)
    out = triplet_margin_loss(a, p, n, margin)
    jax.block_until_ready(out)
    ref = triplet_margin_loss_ref(a, p, n, margin)
    assert jnp.allclose(out, ref, rtol=1e-5, atol=1e-5), (out, ref)

    # Case 2: lane-wide features + batch not divisible by the tile — exercises
    # the tiled grid and in-kernel partial-block masking.
    B2, D2 = 20, 128
    a2 = jax.random.normal(k_a, (B2, D2), dtype=jnp.float32)
    p2 = jax.random.normal(k_p, (B2, D2), dtype=jnp.float32)
    n2 = jax.random.normal(k_n, (B2, D2), dtype=jnp.float32)
    out2 = triplet_margin_loss(a2, p2, n2, margin, block_rows=8)
    jax.block_until_ready(out2)
    ref2 = triplet_margin_loss_ref(a2, p2, n2, margin)
    assert jnp.allclose(out2, ref2, rtol=1e-5, atol=1e-5), (out2, ref2)

    # Case 3: bf16 inputs (half the HBM traffic; kernel upcasts to f32).
    a3, p3, n3 = (x.astype(jnp.bfloat16) for x in (a, p, n))
    out3 = triplet_margin_loss(a3, p3, n3, margin)
    jax.block_until_ready(out3)
    ref3 = triplet_margin_loss_ref(
        a3.astype(jnp.float32), p3.astype(jnp.float32), n3.astype(jnp.float32), margin
    )
    assert jnp.allclose(out3, ref3, rtol=1e-5, atol=1e-5), (out3, ref3)

    print("KERNEL_OK")
</pallas_src>

<mosaic_0001>
module attributes {stable_mosaic.version = 11 : i64} {
  func.func @_triplet_kernel(%arg0: i32, %arg1: memref<2x128xf32, #tpu.memory_space<vmem>>, %arg2: memref<2x128xf32, #tpu.memory_space<vmem>>, %arg3: memref<2x128xf32, #tpu.memory_space<vmem>>, %arg4: memref<2x4xf32, #tpu.memory_space<vmem>>) attributes {dimension_semantics = [#tpu.dimension_semantics<parallel>], iteration_bounds = array<i64: 1>, scalar_prefetch = 0 : i64, scratch_operands = 0 : i64, tpu.core_type = #tpu.core_type<tc>, window_params = [{transform_indices = @transform_0, window_bounds = array<i64: 2, 128>}, {transform_indices = @transform_1, window_bounds = array<i64: 2, 128>}, {transform_indices = @transform_2, window_bounds = array<i64: 2, 128>}, {transform_indices = @transform_3, window_bounds = array<i64: 2, 4>}]} {
    %c0 = arith.constant 0 : index
    %c0_0 = arith.constant 0 : index
    %0 = vector.load %arg1[%c0, %c0_0] : memref<2x128xf32, #tpu.memory_space<vmem>>, vector<2x128xf32>
    %c0_1 = arith.constant 0 : index
    %c0_2 = arith.constant 0 : index
    %1 = vector.load %arg2[%c0_1, %c0_2] : memref<2x128xf32, #tpu.memory_space<vmem>>, vector<2x128xf32>
    %c0_3 = arith.constant 0 : index
    %c0_4 = arith.constant 0 : index
    %2 = vector.load %arg3[%c0_3, %c0_4] : memref<2x128xf32, #tpu.memory_space<vmem>>, vector<2x128xf32>
    %3 = arith.subf %0, %1 : vector<2x128xf32>
    %4 = arith.subf %0, %2 : vector<2x128xf32>
    %5 = arith.mulf %3, %3 : vector<2x128xf32>
    %6 = arith.mulf %4, %4 : vector<2x128xf32>
    %7 = arith.subf %5, %6 : vector<2x128xf32>
    %8 = tpu.iota {dimensions = array<i32: 0>} : vector<2x1xi32>
    %c2_i32 = arith.constant 2 : i32
    %9 = arith.muli %arg0, %c2_i32 : i32
    %10 = vector.broadcast %9 : i32 to vector<2x1xi32>
    %11 = arith.addi %10, %8 : vector<2x1xi32>
    %12 = vector.extract_strided_slice %7 {offsets = [0, 0], sizes = [2, 32], strides = [1, 1]} : vector<2x128xf32> to vector<2x32xf32>
    %cst = arith.constant dense<0.000000e+00> : vector<2xf32>
    %13 = vector.multi_reduction <add>, %12, %cst [1] : vector<2x32xf32> to vector<2xf32>
    %14 = vector.shape_cast %13 : vector<2xf32> to vector<2x1xf32>
    %cst_5 = arith.constant 1.000000e+00 : f32
    %15 = vector.broadcast %cst_5 : f32 to vector<2x1xf32>
    %16 = arith.addf %14, %15 : vector<2x1xf32>
    %cst_6 = arith.constant 0.000000e+00 : f32
    %17 = vector.broadcast %cst_6 : f32 to vector<2x1xf32>
    %18 = arith.maximumf %16, %17 : vector<2x1xf32>
    %c4_i32 = arith.constant 4 : i32
    %19 = vector.broadcast %c4_i32 : i32 to vector<2x1xi32>
    %20 = arith.muli %11, %19 : vector<2x1xi32>
    %c0_i32 = arith.constant 0 : i32
    %21 = vector.broadcast %c0_i32 : i32 to vector<2x1xi32>
    %22 = arith.addi %20, %21 : vector<2x1xi32>
    %c8_i32 = arith.constant 8 : i32
    %23 = vector.broadcast %c8_i32 : i32 to vector<2x1xi32>
    %24 = arith.cmpi slt, %22, %23 : vector<2x1xi32>
    %cst_7 = arith.constant 0.000000e+00 : f32
    %25 = vector.broadcast %cst_7 : f32 to vector<2x1xf32>
    %26 = arith.select %24, %18, %25 : vector<2x1xi1>, vector<2x1xf32>
    %c0_8 = arith.constant 0 : index
    %c0_9 = arith.constant 0 : index
    %27 = vector.load %arg4[%c0_8, %c0_9] : memref<2x4xf32, #tpu.memory_space<vmem>>, vector<2x1xf32>
    tpu.vector_store %arg4[%c0_8, %c0_9], %26 {strides = array<i32>} : memref<2x4xf32, #tpu.memory_space<vmem>>, vector<2x1xf32>,
    %28 = vector.extract_strided_slice %7 {offsets = [0, 32], sizes = [2, 32], strides = [1, 1]} : vector<2x128xf32> to vector<2x32xf32>
    %cst_10 = arith.constant dense<0.000000e+00> : vector<2xf32>
    %29 = vector.multi_reduction <add>, %28, %cst_10 [1] : vector<2x32xf32> to vector<2xf32>
    %30 = vector.shape_cast %29 : vector<2xf32> to vector<2x1xf32>
    %cst_11 = arith.constant 1.000000e+00 : f32
    %31 = vector.broadcast %cst_11 : f32 to vector<2x1xf32>
    %32 = arith.addf %30, %31 : vector<2x1xf32>
    %cst_12 = arith.constant 0.000000e+00 : f32
    %33 = vector.broadcast %cst_12 : f32 to vector<2x1xf32>
    %34 = arith.maximumf %32, %33 : vector<2x1xf32>
    %c4_i32_13 = arith.constant 4 : i32
    %35 = vector.broadcast %c4_i32_13 : i32 to vector<2x1xi32>
    %36 = arith.muli %11, %35 : vector<2x1xi32>
    %c1_i32 = arith.constant 1 : i32
    %37 = vector.broadcast %c1_i32 : i32 to vector<2x1xi32>
    %38 = arith.addi %36, %37 : vector<2x1xi32>
    %c8_i32_14 = arith.constant 8 : i32
    %39 = vector.broadcast %c8_i32_14 : i32 to vector<2x1xi32>
    %40 = arith.cmpi slt, %38, %39 : vector<2x1xi32>
    %cst_15 = arith.constant 0.000000e+00 : f32
    %41 = vector.broadcast %cst_15 : f32 to vector<2x1xf32>
    %42 = arith.select %40, %34, %41 : vector<2x1xi1>, vector<2x1xf32>
    %c0_16 = arith.constant 0 : index
    %c1 = arith.constant 1 : index
    %43 = vector.load %arg4[%c0_16, %c1] : memref<2x4xf32, #tpu.memory_space<vmem>>, vector<2x1xf32>
    tpu.vector_store %arg4[%c0_16, %c1], %42 {strides = array<i32>} : memref<2x4xf32, #tpu.memory_space<vmem>>, vector<2x1xf32>,
    %44 = vector.extract_strided_slice %7 {offsets = [0, 64], sizes = [2, 32], strides = [1, 1]} : vector<2x128xf32> to vector<2x32xf32>
    %cst_17 = arith.constant dense<0.000000e+00> : vector<2xf32>
    %45 = vector.multi_reduction <add>, %44, %cst_17 [1] : vector<2x32xf32> to vector<2xf32>
    %46 = vector.shape_cast %45 : vector<2xf32> to vector<2x1xf32>
    %cst_18 = arith.constant 1.000000e+00 : f32
    %47 = vector.broadcast %cst_18 : f32 to vector<2x1xf32>
    %48 = arith.addf %46, %47 : vector<2x1xf32>
    %cst_19 = arith.constant 0.000000e+00 : f32
    %49 = vector.broadcast %cst_19 : f32 to vector<2x1xf32>
    %50 = arith.maximumf %48, %49 : vector<2x1xf32>
    %c4_i32_20 = arith.constant 4 : i32
    %51 = vector.broadcast %c4_i32_20 : i32 to vector<2x1xi32>
    %52 = arith.muli %11, %51 : vector<2x1xi32>
    %c2_i32_21 = arith.constant 2 : i32
    %53 = vector.broadcast %c2_i32_21 : i32 to vector<2x1xi32>
    %54 = arith.addi %52, %53 : vector<2x1xi32>
    %c8_i32_22 = arith.constant 8 : i32
    %55 = vector.broadcast %c8_i32_22 : i32 to vector<2x1xi32>
    %56 = arith.cmpi slt, %54, %55 : vector<2x1xi32>
    %cst_23 = arith.constant 0.000000e+00 : f32
    %57 = vector.broadcast %cst_23 : f32 to vector<2x1xf32>
    %58 = arith.select %56, %50, %57 : vector<2x1xi1>, vector<2x1xf32>
    %c0_24 = arith.constant 0 : index
    %c2 = arith.constant 2 : index
    %59 = vector.load %arg4[%c0_24, %c2] : memref<2x4xf32, #tpu.memory_space<vmem>>, vector<2x1xf32>
    tpu.vector_store %arg4[%c0_24, %c2], %58 {strides = array<i32>} : memref<2x4xf32, #tpu.memory_space<vmem>>, vector<2x1xf32>,
    %60 = vector.extract_strided_slice %7 {offsets = [0, 96], sizes = [2, 32], strides = [1, 1]} : vector<2x128xf32> to vector<2x32xf32>
    %cst_25 = arith.constant dense<0.000000e+00> : vector<2xf32>
    %61 = vector.multi_reduction <add>, %60, %cst_25 [1] : vector<2x32xf32> to vector<2xf32>
    %62 = vector.shape_cast %61 : vector<2xf32> to vector<2x1xf32>
    %cst_26 = arith.constant 1.000000e+00 : f32
    %63 = vector.broadcast %cst_26 : f32 to vector<2x1xf32>
    %64 = arith.addf %62, %63 : vector<2x1xf32>
    %cst_27 = arith.constant 0.000000e+00 : f32
    %65 = vector.broadcast %cst_27 : f32 to vector<2x1xf32>
    %66 = arith.maximumf %64, %65 : vector<2x1xf32>
    %c4_i32_28 = arith.constant 4 : i32
    %67 = vector.broadcast %c4_i32_28 : i32 to vector<2x1xi32>
    %68 = arith.muli %11, %67 : vector<2x1xi32>
    %c3_i32 = arith.constant 3 : i32
    %69 = vector.broadcast %c3_i32 : i32 to vector<2x1xi32>
    %70 = arith.addi %68, %69 : vector<2x1xi32>
    %c8_i32_29 = arith.constant 8 : i32
    %71 = vector.broadcast %c8_i32_29 : i32 to vector<2x1xi32>
    %72 = arith.cmpi slt, %70, %71 : vector<2x1xi32>
    %cst_30 = arith.constant 0.000000e+00 : f32
    %73 = vector.broadcast %cst_30 : f32 to vector<2x1xf32>
    %74 = arith.select %72, %66, %73 : vector<2x1xi1>, vector<2x1xf32>
    %c0_31 = arith.constant 0 : index
    %c3 = arith.constant 3 : index
    %75 = vector.load %arg4[%c0_31, %c3] : memref<2x4xf32, #tpu.memory_space<vmem>>, vector<2x1xf32>
    tpu.vector_store %arg4[%c0_31, %c3], %74 {strides = array<i32>} : memref<2x4xf32, #tpu.memory_space<vmem>>, vector<2x1xf32>,
    return
  }
  func.func @transform_0(%arg0: i32) -> (i32, i32) {
    %c0_i32 = arith.constant 0 : i32
    %c0_i32_0 = arith.constant 0 : i32
    return %arg0, %c0_i32 : i32, i32
  }
  func.func @transform_1(%arg0: i32) -> (i32, i32) {
    %c0_i32 = arith.constant 0 : i32
    %c0_i32_0 = arith.constant 0 : i32
    return %arg0, %c0_i32 : i32, i32
  }
  func.func @transform_2(%arg0: i32) -> (i32, i32) {
    %c0_i32 = arith.constant 0 : i32
    %c0_i32_0 = arith.constant 0 : i32
    return %arg0, %c0_i32 : i32, i32
  }
  func.func @transform_3(%arg0: i32) -> (i32, i32) {
    %c0_i32 = arith.constant 0 : i32
    %c0_i32_0 = arith.constant 0 : i32
    return %arg0, %c0_i32 : i32, i32
  }
}

</mosaic_0001>

<bundles_post_ra>
// kernel: tpu_custom_call.1
= control target key start
LH: loop header
LB: loop body
LE: loop exit
PB: predicated region body
PF: predicated region fallthrough
CT: control target
= control target key end

     0   :  { %8 = vsyncpa [#allocation3], 0  ;;  %s286_s0 = inlined_call_operand.hbm [shape: f32[2,128], index: 0, kind: input, shape index: {}]   ;;  %s287_s1 = inlined_call_operand.hbm [shape: f32[2,128], index: 1, kind: input, shape index: {}]   ;;  %s288_s2 = inlined_call_operand.hbm [shape: f32[2,128], index: 2, kind: input, shape index: {}]   ;;  %s289_s3 = inlined_call_operand.hbm [shape: f32[2,4], index: 3, kind: output, shape index: {}]  }
   0x1   :  { %9 = vsyncpa [#allocation6], 0  ;;  %s27_s14 = sshll.u32 %s287_s1, 4  ;;  %s28_s14 = int_to_ptr.hbm [resolvable:$true] %s27_s14 }
   0x2   :  { %10 = vsyncpa [#allocation4], 0  ;;  %s247_s15 = smov [#allocation5]   ;;  %s16_s19 = sshll.u32 %s286_s0, 4  ;;  %s17_s19 = int_to_ptr.hbm [resolvable:$true] %s16_s19 }
   0x3   :  { %s29_s16 = sshll.u32 %s247_s15, 4  ;;  %s248_s20 = smov [#allocation2]   ;;  %s30_s16 = int_to_ptr.vmem [resolvable:$true] %s29_s16 }
   0x4   :  { %32 = dma.hbm_to_vmem [thread:$0]  %s28_s14, 32, %s30_s16, [#allocation6]  }
   0x5   :  { %s18_s21 = sshll.u32 %s248_s20, 4  ;;  %s38_s24 = sshll.u32 %s288_s2, 4  ;;  %s19_s21 = int_to_ptr.vmem [resolvable:$true] %s18_s21  ;;  %s39_s24 = int_to_ptr.hbm [resolvable:$true] %s38_s24 }
   0x6   :  { %21 = dma.hbm_to_vmem [thread:$0]  %s17_s19, 32, %s19_s21, [#allocation3]  }
   0x7   :  { %s249_s1 = smov [#allocation7]  }
   0x8   :  { %s40_s25 = sshll.u32 %s249_s1, 4  ;;  %s41_s25 = int_to_ptr.vmem [resolvable:$true] %s40_s25 }
   0x9   :  { %43 = dma.hbm_to_vmem [thread:$0]  %s39_s24, 32, %s41_s25, [#allocation6]  }
   0xa   :  { %241 = dma.done.wait [#allocation3], 32  }
   0xb   :  { %242 = vsyncadd [#allocation3], 4294967264 }
   0xc   :  { %243 = dma.done.wait [#allocation6], 64  }
   0xd   :  { %244 = vsyncadd [#allocation6], 4294967232  ;;  %v56_v0 = vld [vmem:[#allocation2] sm:$0x3]  ;;  %v57_v1 = vld [vmem:[#allocation5] sm:$0x3]  ;;  %v64_v15 = vlaneseq }
   0xe   :  { %v58_v2 = vld [vmem:[#allocation7] sm:$0x3]  ;;  %v59_v3 = vsub.f32 %v56_v0, %v57_v1  ;;  %s250_s0 = smov 96   ;;  %s251_s2 = smov 32   ;;  %vm69_vm0 = vcmask 254976   ;;  %vm78_vm2 = vcmask 1024  }
   0xf   :  { %v60_v4 = vsub.f32 %v56_v0, %v58_v2  ;;  %s252_s26 = smov 64   ;;  %v65_v16 = vshrl.u32 %v64_v15, 7  ;;  %vm92_vm4 = vcmask 9224   ;;  %s253_s27 = smov [#allocation8]   ;;  %vm105_vm7 = vcmask 17424  }
  0x10   :  { %v61_v5 = vmul.f32 %v59_v3, %v59_v3  ;;  %s125_s28 = sshll.u32 %s253_s27, 4  ;;  %s127_s4 = sshll.u32 %s289_s3, 4  ;;  %vm118_vm8 = vcmask 25624   ;;  %s126_s28 = int_to_ptr.vmem [resolvable:$true] %s125_s28  ;;  %s128_s4 = int_to_ptr.hbm [resolvable:$true] %s127_s4 }
  0x11   :  { %v62_v6 = vmul.f32 %v60_v4, %v60_v4  ;;  %v75_v17 = vmul.u32 4, %v65_v16 }
  0x13   :  { %v63_v7 = vsub.f32 %v61_v5, %v62_v6  ;;  %vm76_vm1 = vcmp.lt.s32.totalorder %v75_v17, 8  ;;  %v89_v22 = vadd.s32 1, %v75_v17  ;;  %v115_v29 = vadd.s32 3, %v75_v17 }
  0x14   :  { %v102_v30 = vadd.s32 2, %v75_v17 }
  0x15   :  { %81 = vrot.lane.b32.xlu0 %v63_v7, %s250_s0  ;;  %107 = vrot.lane.b32.xlu1 %v63_v7, %s251_s2  ;;  %v70_v8 = vsel %vm69_vm0, %v63_v7, 0.0  ;;  %vm90_vm3 = vcmp.lt.s32.totalorder %v89_v22, 8  ;;  %vm116_vm5 = vcmp.lt.s32.totalorder %v115_v29, 8 }
  0x16   :  { %vm103_vm6 = vcmp.lt.s32.totalorder %v102_v30, 8 }
  0x1d   :  { %94 = vrot.lane.b32.xlu0 %v63_v7, %s252_s26 }
  0x3f   :  { %71 = vadd.xlane.f32.xlu1 %v70_v8 }
  0x87   :  { %v82_v9 = vpop.permute.xlu0 %81  ;;  %v108_v10 = vpop.permute.xlu1 %107 }
  0x88   :  { %v84_v11 = vsel %vm69_vm0, %v82_v9, 0.0  ;;  %v110_v12 = vsel %vm69_vm0, %v108_v10, 0.0 }
  0x89   :  { %85 = vadd.xlane.f32.xlu2 %v84_v11  ;;  %111 = vadd.xlane.f32.xlu0 %v110_v12 }
  0x8f   :  { %v95_v13 = vpop.permute.xlu0 %94 }
  0x90   :  { %v97_v14 = vsel %vm69_vm0, %v95_v13, 0.0 }
  0x91   :  { %98 = vadd.xlane.f32.xlu2 %v97_v14 }
  0xb2   :  { %v72_v18 = vpop.xlane.xlu1 %71 }
  0xb3   :  { %v73_v19 = vadd.f32 1.0, %v72_v18 }
  0xb5   :  { %v74_v20 = vmax.f32 %v73_v19, 0.0 }
  0xb7   :  { %v77_v21 = vsel %vm76_vm1, %v74_v20, 0.0 }
  0xb8   :  { %79 = vst.msk [vmem:[#allocation8] sm:$0x3] %vm78_vm2, %v77_v21 }
  0xfc   :  { %v86_v23 = vpop.xlane.xlu2 %85  ;;  %v112_v25 = vpop.xlane.xlu0 %111 }
  0xfd   :  { %v87_v24 = vadd.f32 1.0, %v86_v23  ;;  %v113_v27 = vadd.f32 1.0, %v112_v25 }
  0xff   :  { %v88_v26 = vmax.f32 %v87_v24, 0.0  ;;  %v114_v32 = vmax.f32 %v113_v27, 0.0 }
 0x101   :  { %v91_v28 = vsel %vm90_vm3, %v88_v26, 0.0  ;;  %v117_v35 = vsel %vm116_vm5, %v114_v32, 0.0 }
 0x102   :  { %93 = vst.msk [vmem:[#allocation8] sm:$0x3] %vm92_vm4, %v91_v28 }
 0x104   :  { %v99_v31 = vpop.xlane.xlu2 %98 }
 0x105   :  { %v100_v33 = vadd.f32 1.0, %v99_v31 }
 0x107   :  { %v101_v34 = vmax.f32 %v100_v33, 0.0 }
 0x109   :  { %v104_v36 = vsel %vm103_vm6, %v101_v34, 0.0 }
 0x10a   :  { %106 = vst.msk [vmem:[#allocation8] sm:$0x3] %vm105_vm7, %v104_v36 }
 0x10b   :  { %119 = vst.msk [vmem:[#allocation8] sm:$0x3] %vm118_vm8, %v117_v35 }
 0x10c   :  { %130 = dma.vmem_to_hbm [thread:$0]  %s126_s28, 32, %s128_s4, [#allocation4]  }
 0x10d   :  { %245 = dma.done.wait [#allocation4], 32  }
 0x10e   :  { %246 = vsyncadd [#allocation4], 4294967264 }
 0x10f   :  { %135 = vsyncpa [#allocation3], 1 }
 0x110   :  { %136 = vsyncpa [#allocation6], 1 }
 0x111   :  { %137 = vsyncpa [#allocation4], 1 }

</bundles_post_ra>
